<compile_context>
chip_gen: v7x
topology: tpu7x:2x2x1
jax: 0.10.0
libtpu: 0.0.40
codegen_flags: <defaults>
</compile_context>

<pallas_src>
import functools

import jax
import jax.numpy as jnp
from jax.experimental import pallas as pl
from jax.experimental.pallas import tpu as pltpu


def _downsample1d_kernel(x_ref, w_ref, b_ref, o_ref, *, compute_dtype):
    # x_ref : (TB, C, L_in)   NCL input block, L_in = 2 * L_out (even)
    # w_ref : (3, C, C)       per-tap weights, w_ref[k] = weight[:, :, k] (C_out, C_in)
    # b_ref : (C, 1)          bias, float32
    # o_ref : (TB, C, L_out)  NCL output block
    tb, _, l_in = x_ref.shape
    l_out = o_ref.shape[2]

    w0 = w_ref[0]
    w1 = w_ref[1]
    w2 = w_ref[2]
    bias = b_ref[...]                                     # (C, 1) f32

    # 0/1 selection matrices (L_in, L_out), hoisted out of the batch loop.
    # Column o of (x @ S_*) picks input column:
    #   S_e -> 2o   (tap k=1), S_o -> 2o+1 (tap k=2),
    #   S_p -> 2o-1 (tap k=0; column 0 is all-zero == the conv's left pad).
    row = jax.lax.broadcasted_iota(jnp.int32, (l_in, l_out), 0)
    col = jax.lax.broadcasted_iota(jnp.int32, (l_in, l_out), 1)
    s_e = jnp.where(row == 2 * col, 1.0, 0.0).astype(compute_dtype)
    s_o = jnp.where(row == 2 * col + 1, 1.0, 0.0).astype(compute_dtype)
    s_p = jnp.where(row == 2 * col - 1, 1.0, 0.0).astype(compute_dtype)

    def body(b, carry):
        xb = x_ref[b].astype(compute_dtype)               # (C, L_in) contiguous load
        # Even / odd / shifted-odd de-interleave on the MXU (exact: 0/1 weights).
        t_e = jnp.dot(xb, s_e, preferred_element_type=jnp.float32).astype(compute_dtype)
        t_o = jnp.dot(xb, s_o, preferred_element_type=jnp.float32).astype(compute_dtype)
        t_p = jnp.dot(xb, s_p, preferred_element_type=jnp.float32).astype(compute_dtype)
        # Per-tap (C, C) @ (C, L_out) matmuls, f32 accumulation.
        acc = jnp.dot(w1, t_e, preferred_element_type=jnp.float32)
        acc = acc + jnp.dot(w2, t_o, preferred_element_type=jnp.float32)
        acc = acc + jnp.dot(w0, t_p, preferred_element_type=jnp.float32)
        o_ref[b] = (acc + bias).astype(o_ref.dtype)       # NCL store, f32 epilogue
        return carry

    jax.lax.fori_loop(0, tb, body, 0)


def _vmem_capacity_bytes():
    try:
        return int(pltpu.get_tpu_info().vmem_capacity_bytes)
    except Exception:
        return 64 << 20        # v7x value = smallest across v5e/v6e/v7x -> always safe


def _num_tensorcores():
    try:
        dev = jax.devices()[0]
        for attr in ("num_cores", "core_count", "num_tensorcores"):
            v = getattr(dev, attr, None)
            if v:
                return int(v)
    except Exception:
        pass
    return 1


def _pick_batch_tile(n, c, l_in, l_out, in_isz, out_isz, w_isz, vmem_cap, cores):
    # Double-buffered input + output blocks per batch row; weights/bias resident.
    per_row = 2 * c * (l_in * in_isz + l_out * out_isz)
    resident = 2 * (3 * c * c * w_isz) + 2 * c * 4
    budget = max(2 << 20, min(vmem_cap // 4, 24 << 20) - resident)
    tb = max(1, min(n, budget // max(per_row, 1), 1024))
    if cores >= 2 and n >= 2:                 # >=2 grid steps only on multi-TC chips
        tb = min(tb, max(1, -(-n // 2)))
    return int(tb)


def downsample1d(x, weight, bias, *, compute_dtype=jnp.bfloat16, interpret=False):
    """Forward of Downsample1d: Conv1d(dim, dim, kernel_size=3, stride=2, padding=1).

    x      : (N, C, L)  PyTorch NCL layout
    weight : (C, C, 3)  PyTorch Conv1d weight (out_ch, in_ch, k)
    bias   : (C,)
    returns: (N, C, L_out), L_out = (L - 1)//2 + 1
    """
    n, c, l = x.shape
    assert weight.shape == (c, c, 3), weight.shape
    assert bias.shape == (c,), bias.shape
    l_out = (l - 1) // 2 + 1
    if l % 2:                       # rare odd-L case: one zero column == conv right pad
        x = jnp.pad(x, ((0, 0), (0, 0), (0, 1)))
    l_in = 2 * l_out

    if compute_dtype is None:
        compute_dtype = x.dtype
    w = jnp.transpose(weight, (2, 0, 1)).astype(compute_dtype)      # (3, C_out, C_in)
    b2d = bias.reshape(c, 1).astype(jnp.float32)

    in_isz = jnp.dtype(x.dtype).itemsize
    out_isz = in_isz
    w_isz = jnp.dtype(compute_dtype).itemsize
    vmem_cap = _vmem_capacity_bytes()
    cores = _num_tensorcores()
    tb = _pick_batch_tile(n, c, l_in, l_out, in_isz, out_isz, w_isz, vmem_cap, cores)

    footprint = (2 * tb * c * (l_in * in_isz + l_out * out_isz)
                 + 2 * 3 * c * c * w_isz + 2 * c * 4)
    vmem_limit = int(min(max(32 << 20, footprint + (8 << 20)), int(vmem_cap * 0.8)))

    kernel = functools.partial(_downsample1d_kernel, compute_dtype=compute_dtype)
    return pl.pallas_call(
        kernel,
        out_shape=jax.ShapeDtypeStruct((n, c, l_out), x.dtype),
        grid_spec=pltpu.PrefetchScalarGridSpec(
            num_scalar_prefetch=0,
            grid=(pl.cdiv(n, tb),),
            in_specs=[
                pl.BlockSpec((tb, c, l_in), lambda i: (i, 0, 0)),
                pl.BlockSpec((3, c, c), lambda i: (0, 0, 0)),       # VMEM-resident weights
                pl.BlockSpec((c, 1), lambda i: (0, 0)),             # VMEM-resident bias
            ],
            out_specs=pl.BlockSpec((tb, c, l_out), lambda i: (i, 0, 0)),
        ),
        compiler_params=pltpu.CompilerParams(
            dimension_semantics=("parallel",),
            vmem_limit_bytes=vmem_limit,
        ),
        interpret=interpret,
    )(x, w, b2d)


def _reference_conv1d(x, weight, bias):
    out = jax.lax.conv_general_dilated(
        x, weight,
        window_strides=(2,),
        padding=((1, 1),),
        dimension_numbers=("NCH", "OIH", "NCH"),
        precision=jax.lax.Precision.HIGHEST,
    )
    return out + bias[None, :, None]


if __name__ == "__main__":
    key = jax.random.PRNGKey(0)
    kx, kw, kb = jax.random.split(key, 3)

    N, C, L = 2, 4, 16           # Downsample1d(dim=4) on a length-16 horizon
    x = jax.random.normal(kx, (N, C, L), dtype=jnp.float32)
    weight = jax.random.normal(kw, (C, C, 3), dtype=jnp.float32) * 0.2
    bias = jax.random.normal(kb, (C,), dtype=jnp.float32) * 0.1

    ref = jax.block_until_ready(_reference_conv1d(x, weight, bias))

    # Full-precision path.
    out_f32 = jax.block_until_ready(
        downsample1d(x, weight, bias, compute_dtype=jnp.float32))
    assert out_f32.shape == (N, C, (L - 1) // 2 + 1), out_f32.shape
    assert jnp.allclose(out_f32, ref, atol=1e-3, rtol=1e-3), "f32 path mismatch vs lax conv"

    # Default (bf16 matmul operands, f32 accumulation) path.
    out_bf16 = jax.block_until_ready(downsample1d(x, weight, bias))
    assert out_bf16.shape == ref.shape, out_bf16.shape
    assert jnp.allclose(out_bf16, ref, atol=5e-2, rtol=5e-2), "bf16 path mismatch vs lax conv"

    print("KERNEL_OK")
</pallas_src>

<mosaic_0001>
module attributes {stable_mosaic.version = 11 : i64} {
  func.func @_downsample1d_kernel(%arg0: i32, %arg1: memref<2x4x16xf32, #tpu.memory_space<vmem>>, %arg2: memref<3x4x4xf32, #tpu.memory_space<vmem>>, %arg3: memref<4x1xf32, #tpu.memory_space<vmem>>, %arg4: memref<2x4x8xf32, #tpu.memory_space<vmem>>) attributes {dimension_semantics = [#tpu.dimension_semantics<parallel>], iteration_bounds = array<i64: 1>, scalar_prefetch = 0 : i64, scratch_operands = 0 : i64, tpu.core_type = #tpu.core_type<tc>, window_params = [{transform_indices = @transform_0, window_bounds = array<i64: 2, 4, 16>}, {pipeline_mode = #tpu.pipeline_mode<synchronous>, transform_indices = @transform_1, window_bounds = array<i64: 3, 4, 4>}, {pipeline_mode = #tpu.pipeline_mode<synchronous>, transform_indices = @transform_2, window_bounds = array<i64: 4, 1>}, {transform_indices = @transform_3, window_bounds = array<i64: 2, 4, 8>}]} {
    %c0 = arith.constant 0 : index
    %c0_0 = arith.constant 0 : index
    %c0_1 = arith.constant 0 : index
    %0 = vector.load %arg2[%c0, %c0_0, %c0_1] : memref<3x4x4xf32, #tpu.memory_space<vmem>>, vector<1x4x4xf32>
    %1 = vector.shape_cast %0 : vector<1x4x4xf32> to vector<4x4xf32>
    %c1 = arith.constant 1 : index
    %c0_2 = arith.constant 0 : index
    %c0_3 = arith.constant 0 : index
    %2 = vector.load %arg2[%c1, %c0_2, %c0_3] : memref<3x4x4xf32, #tpu.memory_space<vmem>>, vector<1x4x4xf32>
    %3 = vector.shape_cast %2 : vector<1x4x4xf32> to vector<4x4xf32>
    %c2 = arith.constant 2 : index
    %c0_4 = arith.constant 0 : index
    %c0_5 = arith.constant 0 : index
    %4 = vector.load %arg2[%c2, %c0_4, %c0_5] : memref<3x4x4xf32, #tpu.memory_space<vmem>>, vector<1x4x4xf32>
    %5 = vector.shape_cast %4 : vector<1x4x4xf32> to vector<4x4xf32>
    %c0_6 = arith.constant 0 : index
    %c0_7 = arith.constant 0 : index
    %6 = vector.load %arg3[%c0_6, %c0_7] : memref<4x1xf32, #tpu.memory_space<vmem>>, vector<4x1xf32>
    %7 = tpu.iota {dimensions = array<i32: 0>} : vector<16x8xi32>
    %8 = tpu.iota {dimensions = array<i32: 1>} : vector<16x8xi32>
    %c2_i32 = arith.constant 2 : i32
    %9 = vector.broadcast %c2_i32 : i32 to vector<16x8xi32>
    %10 = arith.muli %9, %8 : vector<16x8xi32>
    %11 = arith.cmpi eq, %7, %10 : vector<16x8xi32>
    %cst = arith.constant 1.000000e+00 : f32
    %cst_8 = arith.constant 0.000000e+00 : f32
    %12 = vector.broadcast %cst : f32 to vector<16x8xf32>
    %13 = vector.broadcast %cst_8 : f32 to vector<16x8xf32>
    %14 = arith.select %11, %12, %13 : vector<16x8xi1>, vector<16x8xf32>
    %c2_i32_9 = arith.constant 2 : i32
    %15 = vector.broadcast %c2_i32_9 : i32 to vector<16x8xi32>
    %16 = arith.muli %15, %8 : vector<16x8xi32>
    %c1_i32 = arith.constant 1 : i32
    %17 = vector.broadcast %c1_i32 : i32 to vector<16x8xi32>
    %18 = arith.addi %16, %17 : vector<16x8xi32>
    %19 = arith.cmpi eq, %7, %18 : vector<16x8xi32>
    %cst_10 = arith.constant 1.000000e+00 : f32
    %cst_11 = arith.constant 0.000000e+00 : f32
    %20 = vector.broadcast %cst_10 : f32 to vector<16x8xf32>
    %21 = vector.broadcast %cst_11 : f32 to vector<16x8xf32>
    %22 = arith.select %19, %20, %21 : vector<16x8xi1>, vector<16x8xf32>
    %c2_i32_12 = arith.constant 2 : i32
    %23 = vector.broadcast %c2_i32_12 : i32 to vector<16x8xi32>
    %24 = arith.muli %23, %8 : vector<16x8xi32>
    %c1_i32_13 = arith.constant 1 : i32
    %25 = vector.broadcast %c1_i32_13 : i32 to vector<16x8xi32>
    %26 = arith.subi %24, %25 : vector<16x8xi32>
    %27 = arith.cmpi eq, %7, %26 : vector<16x8xi32>
    %cst_14 = arith.constant 1.000000e+00 : f32
    %cst_15 = arith.constant 0.000000e+00 : f32
    %28 = vector.broadcast %cst_14 : f32 to vector<16x8xf32>
    %29 = vector.broadcast %cst_15 : f32 to vector<16x8xf32>
    %30 = arith.select %27, %28, %29 : vector<16x8xi1>, vector<16x8xf32>
    %c0_i32 = arith.constant 0 : i32
    %c2_i32_16 = arith.constant 2 : i32
    %31 = arith.addi %c0_i32, %c2_i32_16 : i32
    %c1_i32_17 = arith.constant 1 : i32
    scf.for %arg5 = %c0_i32 to %31 step %c1_i32_17  : i32 {
      %32 = arith.index_cast %arg5 : i32 to index
      %c0_19 = arith.constant 0 : index
      %c0_20 = arith.constant 0 : index
      %33 = vector.load %arg1[%32, %c0_19, %c0_20] : memref<2x4x16xf32, #tpu.memory_space<vmem>>, vector<1x4x16xf32>
      %34 = vector.shape_cast %33 : vector<1x4x16xf32> to vector<4x16xf32>
      %cst_21 = arith.constant dense<0.000000e+00> : vector<4x8xf32>
      %35 = tpu.matmul %34, %14, %cst_21 {dimension_numbers = #tpu.dot_dimension_numbers<[1], [0], [0], [1], [0, 0, 1, 1], [], []>} : vector<4x16xf32>, vector<16x8xf32>, vector<4x8xf32> -> vector<4x8xf32>
      %cst_22 = arith.constant dense<0.000000e+00> : vector<4x8xf32>
      %36 = tpu.matmul %34, %22, %cst_22 {dimension_numbers = #tpu.dot_dimension_numbers<[1], [0], [0], [1], [0, 0, 1, 1], [], []>} : vector<4x16xf32>, vector<16x8xf32>, vector<4x8xf32> -> vector<4x8xf32>
      %cst_23 = arith.constant dense<0.000000e+00> : vector<4x8xf32>
      %37 = tpu.matmul %34, %30, %cst_23 {dimension_numbers = #tpu.dot_dimension_numbers<[1], [0], [0], [1], [0, 0, 1, 1], [], []>} : vector<4x16xf32>, vector<16x8xf32>, vector<4x8xf32> -> vector<4x8xf32>
      %cst_24 = arith.constant dense<0.000000e+00> : vector<4x8xf32>
      %38 = tpu.matmul %3, %35, %cst_24 {dimension_numbers = #tpu.dot_dimension_numbers<[1], [0], [0], [1], [0, 0, 1, 1], [], []>} : vector<4x4xf32>, vector<4x8xf32>, vector<4x8xf32> -> vector<4x8xf32>
      %cst_25 = arith.constant dense<0.000000e+00> : vector<4x8xf32>
      %39 = tpu.matmul %5, %36, %cst_25 {dimension_numbers = #tpu.dot_dimension_numbers<[1], [0], [0], [1], [0, 0, 1, 1], [], []>} : vector<4x4xf32>, vector<4x8xf32>, vector<4x8xf32> -> vector<4x8xf32>
      %40 = arith.addf %38, %39 : vector<4x8xf32>
      %cst_26 = arith.constant dense<0.000000e+00> : vector<4x8xf32>
      %41 = tpu.matmul %1, %37, %cst_26 {dimension_numbers = #tpu.dot_dimension_numbers<[1], [0], [0], [1], [0, 0, 1, 1], [], []>} : vector<4x4xf32>, vector<4x8xf32>, vector<4x8xf32> -> vector<4x8xf32>
      %42 = arith.addf %40, %41 : vector<4x8xf32>
      %43 = vector.broadcast %6 : vector<4x1xf32> to vector<4x8xf32>
      %44 = arith.addf %42, %43 : vector<4x8xf32>
      %45 = arith.index_cast %arg5 : i32 to index
      %c0_27 = arith.constant 0 : index
      %c0_28 = arith.constant 0 : index
      %46 = vector.load %arg4[%45, %c0_27, %c0_28] : memref<2x4x8xf32, #tpu.memory_space<vmem>>, vector<1x4x8xf32>
      %47 = vector.shape_cast %46 : vector<1x4x8xf32> to vector<4x8xf32>
      %48 = vector.shape_cast %44 : vector<4x8xf32> to vector<1x4x8xf32>
      tpu.vector_store %arg4[%45, %c0_27, %c0_28], %48 {strides = array<i32>} : memref<2x4x8xf32, #tpu.memory_space<vmem>>, vector<1x4x8xf32>,
    }
    %c2_i32_18 = arith.constant 2 : i32
    return
  }
  func.func @transform_0(%arg0: i32) -> (i32, i32, i32) {
    %c0_i32 = arith.constant 0 : i32
    %c0_i32_0 = arith.constant 0 : i32
    %c0_i32_1 = arith.constant 0 : i32
    return %arg0, %c0_i32, %c0_i32_0 : i32, i32, i32
  }
  func.func @transform_1(%arg0: i32) -> (i32, i32, i32) {
    %c0_i32 = arith.constant 0 : i32
    %c0_i32_0 = arith.constant 0 : i32
    %c0_i32_1 = arith.constant 0 : i32
    %c0_i32_2 = arith.constant 0 : i32
    return %c0_i32, %c0_i32_0, %c0_i32_1 : i32, i32, i32
  }
  func.func @transform_2(%arg0: i32) -> (i32, i32) {
    %c0_i32 = arith.constant 0 : i32
    %c0_i32_0 = arith.constant 0 : i32
    %c0_i32_1 = arith.constant 0 : i32
    return %c0_i32, %c0_i32_0 : i32, i32
  }
  func.func @transform_3(%arg0: i32) -> (i32, i32, i32) {
    %c0_i32 = arith.constant 0 : i32
    %c0_i32_0 = arith.constant 0 : i32
    %c0_i32_1 = arith.constant 0 : i32
    return %arg0, %c0_i32, %c0_i32_0 : i32, i32, i32
  }
}

</mosaic_0001>

<bundles_post_ra>
// kernel: tpu_custom_call.1
= control target key start
LH: loop header
LB: loop body
LE: loop exit
PB: predicated region body
PF: predicated region fallthrough
CT: control target
= control target key end

     0   :  { %8 = vsyncpa [#allocation3], 0  ;;  %s890_s0 = inlined_call_operand.hbm [shape: f32[2,4,16], index: 0, kind: input, shape index: {}]   ;;  %s891_s1 = inlined_call_operand.hbm [shape: f32[3,4,4], index: 1, kind: input, shape index: {}]   ;;  %s892_s2 = inlined_call_operand.vmem [shape: f32[4,1], index: 2, kind: input, shape index: {}]   ;;  %s893_s3 = inlined_call_operand.hbm [shape: f32[2,4,8], index: 3, kind: output, shape index: {}]  }
   0x1   :  { %9 = vsyncpa [#allocation6], 0 }
   0x2   :  { %10 = vsyncpa [#allocation4], 0  ;;  %s735_s12 = smov [#allocation2]   ;;  %s655_s16 = scalar_lea.hbm %s890_s0, 128 }
   0x3   :  { %s16_s13 = sshll.u32 %s735_s12, 4  ;;  %p656_p0 = scmp.ne.s32.totalorder %s890_s0, %s655_s16  ;;  %s17_s13 = int_to_ptr.vmem [resolvable:$true] %s16_s13 }
   0x4   :  { %p659_p1 = scmp.lt.u32.totalorder %s655_s16, %s890_s0 }
   0x6   :  { %p661_p2 = pnand %p659_p1, %p656_p0 }
   0x8   :  { %664 = shalt.err (!%p661_p2)
}
   0x9   :  { %s665_s21 = scalar_lea.vmem %s17_s13, 128  ;;  %p670_p4 = scmp.lt.s32.totalorder %s17_s13, %s17_s13 }
   0xa   :  { %p666_p3 = scmp.ne.s32.totalorder %s17_s13, %s665_s21  ;;  %p671_p5 = scmp.lt.s32.totalorder %s665_s21, %s665_s21 }
   0xc   :  { %p672_p6 = por %p671_p5, %p670_p4 }
   0xe   :  { %p673_p7 = pnand %p672_p6, %p666_p3 }
  0x10   :  { %676 = shalt.err (!%p673_p7)
}
  0x11   :  { %s736_s22 = smov 64   ;;  %s737_s23 = smov 4  }
  0x12   :  { %22 = dma.hbm_to_vmem [thread:$0]  %s890_s0, 128, %s17_s13, [#allocation3], %s736_s22, %s736_s22, %s737_s23  }
  0x13   :  { %s738_s26 = smov [#allocation5]   ;;  %s677_s30 = scalar_lea.hbm %s891_s1, 192 }
  0x14   :  { %s28_s27 = sshll.u32 %s738_s26, 4  ;;  %p678_p8 = scmp.ne.s32.totalorder %s891_s1, %s677_s30  ;;  %s29_s27 = int_to_ptr.vmem [resolvable:$true] %s28_s27 }
  0x15   :  { %p681_p9 = scmp.lt.u32.totalorder %s677_s30, %s891_s1 }
  0x17   :  { %p683_p10 = pnand %p681_p9, %p678_p8 }
  0x19   :  { %686 = shalt.err (!%p683_p10)
}
  0x1a   :  { %s687_s8 = scalar_lea.vmem %s29_s27, 192  ;;  %p692_p12 = scmp.lt.s32.totalorder %s29_s27, %s29_s27 }
  0x1b   :  { %p688_p11 = scmp.ne.s32.totalorder %s29_s27, %s687_s8  ;;  %p693_p13 = scmp.lt.s32.totalorder %s687_s8, %s687_s8 }
  0x1d   :  { %p694_p0 = por %p693_p13, %p692_p12 }
  0x1f   :  { %p695_p1 = pnand %p694_p0, %p688_p11 }
  0x21   :  { %698 = shalt.err (!%p695_p1)
}
  0x22   :  { %34 = dma.hbm_to_vmem [thread:$0]  %s891_s1, 192, %s29_s27, [#allocation6], %s736_s22, %s736_s22, %s737_s23  }
  0x23   :  { %725 = dma.done.wait [#allocation3], 128  }
  0x24   :  { %726 = vsyncadd [#allocation3], 4294967168 }
  0x25   :  { %727 = dma.done.wait [#allocation6], 192  }
  0x26   :  { %728 = vsyncadd [#allocation6], 4294967104  ;;  %v49_v0 = vlaneseq  ;;  %v812_v7 = vld [vmem:[#allocation5] sm:$0xf]  ;;  %v814_v8 = vld [vmem:[#allocation5 + $0x4] sm:$0xf] }
  0x27   :  { %v816_v9 = vld [vmem:[#allocation5 + $0x8] sm:$0xf]  ;;  %v821_v10 = vld [vmem:[%s892_s2] sm:$0xf]  ;;  %s831_s11 = smov 0  }
  0x28   :  { %v795_v1 = vshrl.u32 %v49_v0, 7  ;;  %v53_v2 = vand.u32 127, %v49_v0 }
  0x2a   :  { %v798_v3 = vadd.s32 8, %v795_v1  ;;  %v800_v4 = vmul.u32 2, %v53_v2 }
  0x2c   :  { %vm55_vm0 = vcmp.eq.s32.totalorder %v795_v1, %v800_v4  ;;  %vm56_vm1 = vcmp.eq.s32.totalorder %v798_v3, %v800_v4  ;;  %v807_v5 = vadd.s32 1, %v800_v4  ;;  %v810_v6 = vadd.s32 4294967295, %v800_v4 }
  0x2e   :  { %vm60_vm2 = vcmp.eq.s32.totalorder %v795_v1, %v807_v5  ;;  %vm61_vm3 = vcmp.eq.s32.totalorder %v798_v3, %v807_v5  ;;  %vm65_vm4 = vcmp.eq.s32.totalorder %v795_v1, %v810_v6  ;;  %vm66_vm5 = vcmp.eq.s32.totalorder %v798_v3, %v810_v6 }
  0x2f LB: > { %vm628_vm6 = vmpackc.low %vm56_vm1, %vm55_vm0  ;;  %v739_v11 = vmov 0.0|0.0   ;;  %v740_v12 = vmov 1.0|1.0   ;;  %s560_s2 = sshll.u32 %s733_s11, 2  ;;  %vm78_vm8 = vcmask 130048   ;;  %vm741_vm9 = vmmov 0   ;;  %s733_s11 = sphi %s831_s11, %s74_s11  }
  0x30   : > { %627 = vmatprep.subr.bf16.mxu0 %v739_v11  ;;  %630 = vmatprep.subr.bf16.mxu1 %v739_v11  ;;  %vm631_vm7 = vmpackc.low %vm61_vm3, %vm60_vm2  ;;  %v742_v13 = vmov 0.0   ;;  %s76_s12 = scalar_lea.vmem [#allocation2], %s560_s2  ;;  %v743_v15 = vmov 0   ;;  %vm296_vm11 = vcmask 1043456   ;;  %vm292_vm12 = vcmask 31744   ;;  %s529_s13 = scalar_lea.vmem [#allocation7], %s560_s2 }
  0x31   : > { %629 = vmatpush3.bf16.msk.msra.mxu0 %vm628_vm6, %v740_v12  ;;  %632 = vmatpush3.bf16.msk.msra.mxu1 %vm631_vm7, %v740_v12  ;;  %vm634_vm10 = vmpackc.low %vm66_vm5, %vm65_vm4  ;;  %v77_v14 = vld [vmem:[%s76_s12] sm:$0xf]  ;;  %vm530_vm13 = vcmask 60416   ;;  %s74_s11 = sadd.s32 1, %s733_s11  }
  0x32   : > { %595 = vmatprep.mubr.msk.f32.mxu0 %vm741_vm9, %v742_v13  ;;  %602 = vmatprep.mubr.msk.f32.mxu1 %vm741_vm9, %v742_v13  ;;  %p71_p2 = scmp.ge.s32.totalorder %s74_s11, 2  }
  0x33   : > { %633 = vmatprep.subr.bf16.mxu0 %v739_v11  ;;  %612 = vmatprep.subr.mxu1 %v742_v13  ;;  %s744_s14 = smov (%p71_p2), [#allocation7]  }
  0x34   : > { %596 = vmatmul.mubr.msk.f32.vlgmr.msra.gmra.mrb[0].mxu0 %vm78_vm8, %v77_v14  ;;  %603 = vmatmul.mubr.msk.f32.vlgmr.msra.gmra.mrb[0].mxu1 %vm78_vm8, %v77_v14  ;;  %s537_s15 = sshll.u32 (%p71_p2), %s744_s14, 4  ;;  %s538_s15 = int_to_ptr.vmem [resolvable:$true] %s537_s15 }
  0x35   : > { %635 = vmatpush3.bf16.msk.msra.mxu0 %vm634_vm10, %v740_v12  ;;  %609 = vmatprep.mubr.msk.f32.mxu0 %vm741_vm9, %v742_v13  ;;  %s699_s16 = scalar_lea.vmem (%p71_p2), %s538_s15, 128  ;;  %p704_p4 = scmp.lt.s32.totalorder (%p71_p2), %s538_s15, %s538_s15 }
  0x36   : > { %617 = vmatprep.subr.mxu0 %v742_v13  ;;  %614 = vmatprep.mubr.msk.f32.mxu1 %vm741_vm9, %v742_v13  ;;  %p700_p3 = scmp.ne.s32.totalorder (%p71_p2), %s538_s15, %s699_s16  ;;  %p705_p5 = scmp.lt.s32.totalorder (%p71_p2), %s699_s16, %s699_s16 }
  0x37   : > { %654 = vset.pattern.permute.xlu0 %v743_v15 }
  0x38   : > { %610 = vmatmul.mubr.msk.f32.vlgmr.msra.gmra.mrb[2].mxu0 %vm78_vm8, %v77_v14  ;;  %525 = vperm.xlu0 %654, %v821_v10   ;;  %p706_p6 = por (%p71_p2), %p705_p5, %p704_p4 }
  0x39   : > { %619 = vmatprep.mubr.msk.f32.mxu0 %vm741_vm9, %v742_v13 }
  0x3a   :  { %p707_p7 = pnand (%p71_p2), %p706_p6, %p700_p3 }
  0xb7   : > { %v526_v28 = vpop.permute.xlu0 %525 }
 0x107   : > { %v148_v16 = vpop.f32.mrb[0].mxu0  ;;  %v218_v17 = vpop.f32.mrb[0].mxu1 }
 0x108   : > { %v597_v18 = vpop.f32.mrb[1].mxu0  ;;  %v604_v19 = vpop.f32.mrb[1].mxu1  ;;  %613 = vmatpush3.msk.msra.mxu1 %vm296_vm11, %v218_v17  ;;  %618 = vmatpush3.msk.msra.mxu0 %vm296_vm11, %v148_v16 }
 0x109   : > { %615 = vmatmul.mubr.msk.f32.vlgmr.msra.gmra.mrb[2].mxu1 %vm292_vm12, %v816_v9  ;;  %622 = vmatprep.subr.mxu1 %v742_v13 }
 0x10a   : > { %620 = vmatmul.mubr.msk.f32.vlgmr.msra.gmra.mrb[4].mxu0 %vm292_vm12, %v814_v8  ;;  %624 = vmatprep.mubr.msk.f32.mxu1 %vm741_vm9, %v742_v13 }
 0x10b   : > { %v288_v20 = vpop.f32.mrb[2].mxu0 }
 0x10c   : > { %v611_v21 = vpop.f32.mrb[3].mxu0  ;;  %623 = vmatpush3.msk.msra.mxu1 %vm296_vm11, %v288_v20 }
 0x10d   : > { %625 = vmatmul.mubr.msk.f32.vlgmr.msra.gmra.mrb[4].mxu1 %vm292_vm12, %v812_v7 }
 0x1dc   : > { %v366_v22 = vpop.f32.mrb[2].mxu1 }
 0x1dd   : > { %v616_v23 = vpop.f32.mrb[3].mxu1  ;;  %v442_v24 = vpop.f32.mrb[4].mxu0 }
 0x1de   : > { %v443_v25 = vadd.f32 %v442_v24, %v366_v22  ;;  %v621_v26 = vpop.f32.mrb[5].mxu0 }
 0x1df   :  { %73 = sbr.rel (!%p71_p2) target bundleno = 47 (0x2f), region = 51 }
 0x1e0   : > { %v518_v27 = vpop.f32.mrb[4].mxu1 }
 0x1e1   : > { %v522_v29 = vadd.f32 %v518_v27, %v443_v25  ;;  %v626_v30 = vpop.f32.mrb[5].mxu1 }
 0x1e3   : > { %v528_v31 = vadd.f32 %v526_v28, %v522_v29 }
 0x1e5   : > { %531 = vst.msk [vmem:[%s529_s13] sm:$0xf] %vm530_vm13, %v528_v31 }
 0x1e6   :  { %710 = shalt.err (!%p707_p7)
}
 0x1e7   :  { %s711_s19 = scalar_lea.hbm %s893_s3, 128 }
 0x1e8   :  { %p712_p8 = scmp.ne.s32.totalorder %s893_s3, %s711_s19  ;;  %p715_p9 = scmp.lt.u32.totalorder %s711_s19, %s893_s3 }
 0x1ea   :  { %p717_p10 = pnand %p715_p9, %p712_p8 }
 0x1ec   :  { %720 = shalt.err (!%p717_p10)
}
 0x1ed   :  { %543 = dma.vmem_to_hbm [thread:$0]  %s538_s15, 128, %s893_s3, [#allocation4], %s736_s22, %s736_s22, %s737_s23  }
 0x1ee   :  { %729 = dma.done.wait [#allocation4], 128  }
 0x1ef   :  { %730 = vsyncadd [#allocation4], 4294967168 }
 0x1f0   :  { %547 = vsyncpa [#allocation3], 1 }
 0x1f1   :  { %548 = vsyncpa [#allocation6], 1 }
 0x1f2   :  { %549 = vsyncpa [#allocation4], 1 }

</bundles_post_ra>
